<compile_context>
chip_gen: v7x
topology: tpu7x:2x2x1
jax: 0.10.0
libtpu: 0.0.40
codegen_flags: <defaults>
</compile_context>

<pallas_src>
import jax
import jax.numpy as jnp
from jax.experimental import pallas as pl
from jax.experimental.pallas import tpu as pltpu

STATE = 2          # config.state_shape
ACT   = 3          # config.action_shape
H1, H2, H3 = 25, 50, 25

LANES = 128        # lane width of the slab and of the fused output
C_LANE = 8         # lane offset of the l3/critic branch inside the fused tile

# Row offsets (all 8-aligned) of each block inside the packed parameter slab.
W1_OFF,   W1_ROWS   = 0,   8     # rows 0..1   : w1  (2 x 25)  on lanes 0..24
W2_OFF,   W2_ROWS   = 8,   32    # rows 0..24  : w2  (25 x 50) on lanes 0..49
WF_OFF,   WF_ROWS   = 40,  56    # rows 0..49  : wa on lanes 0..2, w3 on lanes 8..32
WC_OFF,   WC_ROWS   = 96,  40    # rows 8..32  : wc  (25 x 1)  on lane 3
BIAS_OFF            = 136        # row 0=b1, 1=b2, 2=(ba|b3 fused), 3=bc
SLAB_ROWS           = 144        # 144 x 128 x 4 B ~= 74 KB


def _actor_critic_kernel(x_ref, p_ref, out_ref):
    x = x_ref[...]                                         # (B, STATE)

    # F.normalize(x, p=2, dim=0): x / max(||x||_col, 1e-12) over the batch axis.
    norm = jnp.sqrt(jnp.sum(x * x, axis=0, keepdims=True))  # (1, STATE)
    xn = x / jnp.maximum(norm, 1e-12)

    # Static, tile-aligned views into the packed parameter slab.
    w1 = p_ref[W1_OFF:W1_OFF + W1_ROWS, :]                 # (8, 128)
    w2 = p_ref[W2_OFF:W2_OFF + W2_ROWS, :]                 # (32, 128)
    wf = p_ref[WF_OFF:WF_OFF + WF_ROWS, :]                 # (56, 128)
    wc = p_ref[WC_OFF:WC_OFF + WC_ROWS, :]                 # (40, 128)
    biases = p_ref[BIAS_OFF:BIAS_OFF + 8, :]               # (8, 128)
    b1 = biases[0:1, :]
    b2 = biases[1:2, :]
    bf = biases[2:3, :]                                    # ba on lanes 0..2, b3 on 8..32
    bc = biases[3:4, :]                                    # bc on lane ACT

    # Layer 1 (in-dim 2): two lane-broadcast FMAs on the VPU (no MXU push,
    # no padding of x needed).
    y1 = xn[:, 0:1] * w1[0:1, :] + xn[:, 1:2] * w1[1:2, :] + b1
    y1 = jnp.maximum(y1, 0.0)                              # (B, 128), lanes 0..24 valid

    # Layer 2: K=32 MXU dot (padded lanes/rows are zero -> exact).
    y2 = jnp.maximum(
        jnp.dot(y1[:, :W2_ROWS], w2, preferred_element_type=jnp.float32) + b2, 0.0)

    # Fused actor/l3 head: ONE dot; wa lives on lanes 0..ACT-1, w3 on lanes
    # C_LANE..C_LANE+H3-1 of the same (56, 128) weight tile.
    fused = jnp.dot(y2[:, :WF_ROWS], wf, preferred_element_type=jnp.float32) + bf

    # actor = log_softmax(actor_lin1(y), dim=0)  (softmax over the batch axis,
    # lane-wise — extra lanes also get log-softmaxed but are never read).
    m = jnp.max(fused, axis=0, keepdims=True)              # (1, 128)
    lse = m + jnp.log(jnp.sum(jnp.exp(fused - m), axis=0, keepdims=True))
    actor = fused - lse                                    # lanes 0..ACT-1 valid

    # critic = tanh(critic_lin1(relu(l3(y)))).  The wc tile's rows under the
    # actor-logit lanes (0..7) and padding lanes (33..39) are zero, so the
    # relu'd logits contribute nothing and no extra lane mask is needed.
    c = jnp.maximum(fused[:, :WC_ROWS], 0.0)               # (B, 40)
    critic = jnp.tanh(jnp.dot(c, wc, preferred_element_type=jnp.float32) + bc)
    # critic holds the value on lane ACT; tanh(0) == 0 on every other lane.

    # Single lane-dense output: lanes [0, ACT) = actor, lane ACT = critic.
    lane = jax.lax.broadcasted_iota(jnp.int32, out_ref.shape, 1)
    out_ref[...] = jnp.where(lane < ACT, actor, critic)


@jax.jit
def actor_critic_forward(x, slab):
    """x: (B, STATE) f32, slab: packed params (SLAB_ROWS, 128) f32.
    Returns (actor (B, ACT), critic (B, 1))."""
    B = x.shape[0]
    vmem = pl.BlockSpec(memory_space=pltpu.MemorySpace.VMEM)
    out = pl.pallas_call(
        _actor_critic_kernel,
        out_shape=jax.ShapeDtypeStruct((B, LANES), jnp.float32),
        in_specs=[vmem, vmem],
        out_specs=vmem,
    )(x, slab)
    return out[:, :ACT], out[:, ACT:ACT + 1]


def init_params(key):
    """PyTorch-default-style Linear init (uniform(+-1/sqrt(fan_in))).
    Weights stored transposed as [in_features, out_features]."""
    def linear(key, fan_in, fan_out):
        kw, kb = jax.random.split(key)
        bound = 1.0 / jnp.sqrt(float(fan_in))
        w = jax.random.uniform(kw, (fan_in, fan_out), jnp.float32, -bound, bound)
        b = jax.random.uniform(kb, (1, fan_out), jnp.float32, -bound, bound)
        return w, b

    k1, k2, ka, k3, kc = jax.random.split(key, 5)
    w1, b1 = linear(k1, STATE, H1)
    w2, b2 = linear(k2, H1, H2)
    wa, ba = linear(ka, H2, ACT)
    w3, b3 = linear(k3, H2, H3)
    wc, bc = linear(kc, H3, 1)
    return dict(w1=w1, b1=b1, w2=w2, b2=b2, wa=wa, ba=ba,
                w3=w3, b3=b3, wc=wc, bc=bc)


def pack_params(p):
    """Pack all parameters into one (SLAB_ROWS, 128) lane-aligned f32 slab."""
    slab = jnp.zeros((SLAB_ROWS, LANES), jnp.float32)
    slab = slab.at[W1_OFF:W1_OFF + STATE, :H1].set(p["w1"])
    slab = slab.at[W2_OFF:W2_OFF + H1, :H2].set(p["w2"])
    # Fused head tile: wa on lanes 0..ACT-1, w3 on lanes C_LANE..C_LANE+H3-1.
    slab = slab.at[WF_OFF:WF_OFF + H2, :ACT].set(p["wa"])
    slab = slab.at[WF_OFF:WF_OFF + H2, C_LANE:C_LANE + H3].set(p["w3"])
    # Critic head: rows aligned with the l3 lanes of the fused output, single
    # output column pre-placed on lane ACT (so the kernel emits one lane-dense
    # output with no cross-lane shuffle).
    slab = slab.at[WC_OFF + C_LANE:WC_OFF + C_LANE + H3, ACT:ACT + 1].set(p["wc"])
    slab = slab.at[BIAS_OFF + 0, :H1].set(p["b1"].reshape(-1))
    slab = slab.at[BIAS_OFF + 1, :H2].set(p["b2"].reshape(-1))
    slab = slab.at[BIAS_OFF + 2, :ACT].set(p["ba"].reshape(-1))
    slab = slab.at[BIAS_OFF + 2, C_LANE:C_LANE + H3].set(p["b3"].reshape(-1))
    slab = slab.at[BIAS_OFF + 3, ACT:ACT + 1].set(p["bc"].reshape(-1))
    return slab


def reference_forward(x, p):
    """Pure-JAX reference mirroring the PyTorch forward."""
    xn = x / jnp.maximum(jnp.sqrt(jnp.sum(x * x, axis=0, keepdims=True)), 1e-12)
    y = jax.nn.relu(xn @ p["w1"] + p["b1"])
    y = jax.nn.relu(y @ p["w2"] + p["b2"])
    actor = jax.nn.log_softmax(y @ p["wa"] + p["ba"], axis=0)
    c = jax.nn.relu(y @ p["w3"] + p["b3"])
    critic = jnp.tanh(c @ p["wc"] + p["bc"])
    return actor, critic


if __name__ == "__main__":
    key = jax.random.PRNGKey(0)
    kx, kp = jax.random.split(key)

    B = 8  # small batch of MountainCar states (position, velocity)
    x = jax.random.normal(kx, (B, STATE), jnp.float32)
    params = init_params(kp)
    slab = pack_params(params)

    actor, critic = jax.block_until_ready(actor_critic_forward(x, slab))

    ref_actor, ref_critic = reference_forward(x, params)
    assert actor.shape == (B, ACT) and critic.shape == (B, 1)
    assert jnp.allclose(actor, ref_actor, atol=1e-5, rtol=1e-5)
    assert jnp.allclose(critic, ref_critic, atol=1e-5, rtol=1e-5)

    print("KERNEL_OK")
</pallas_src>

<mosaic_0001>
module attributes {stable_mosaic.version = 11 : i64} {
  func.func @_actor_critic_kernel(%arg0: memref<8x2xf32, #tpu.memory_space<vmem>>, %arg1: memref<144x128xf32, #tpu.memory_space<vmem>>, %arg2: memref<8x128xf32, #tpu.memory_space<vmem>>) attributes {dimension_semantics = [], scalar_prefetch = 0 : i64, scratch_operands = 0 : i64, tpu.core_type = #tpu.core_type<tc>} {
    %c0 = arith.constant 0 : index
    %c0_0 = arith.constant 0 : index
    %0 = vector.load %arg0[%c0, %c0_0] : memref<8x2xf32, #tpu.memory_space<vmem>>, vector<8x2xf32>
    %1 = arith.mulf %0, %0 : vector<8x2xf32>
    %cst = arith.constant dense<0.000000e+00> : vector<2xf32>
    %2 = vector.multi_reduction <add>, %1, %cst [0] : vector<8x2xf32> to vector<2xf32>
    %3 = vector.shape_cast %2 : vector<2xf32> to vector<1x2xf32>
    %4 = math.sqrt %3 : vector<1x2xf32>
    %cst_1 = arith.constant 9.99999996E-13 : f32
    %5 = vector.broadcast %cst_1 : f32 to vector<1x2xf32>
    %6 = arith.maximumf %4, %5 : vector<1x2xf32>
    %7 = vector.broadcast %6 : vector<1x2xf32> to vector<8x2xf32>
    %8 = arith.divf %0, %7 : vector<8x2xf32>
    %c0_2 = arith.constant 0 : index
    %c0_3 = arith.constant 0 : index
    %9 = vector.load %arg1[%c0_2, %c0_3] : memref<144x128xf32, #tpu.memory_space<vmem>>, vector<8x128xf32>
    %c8 = arith.constant 8 : index
    %c0_4 = arith.constant 0 : index
    %10 = vector.load %arg1[%c8, %c0_4] : memref<144x128xf32, #tpu.memory_space<vmem>>, vector<32x128xf32>
    %c40 = arith.constant 40 : index
    %c0_5 = arith.constant 0 : index
    %11 = vector.load %arg1[%c40, %c0_5] : memref<144x128xf32, #tpu.memory_space<vmem>>, vector<56x128xf32>
    %c96 = arith.constant 96 : index
    %c0_6 = arith.constant 0 : index
    %12 = vector.load %arg1[%c96, %c0_6] : memref<144x128xf32, #tpu.memory_space<vmem>>, vector<40x128xf32>
    %c136 = arith.constant 136 : index
    %c0_7 = arith.constant 0 : index
    %13 = vector.load %arg1[%c136, %c0_7] : memref<144x128xf32, #tpu.memory_space<vmem>>, vector<8x128xf32>
    %14 = vector.extract_strided_slice %13 {offsets = [0, 0], sizes = [1, 128], strides = [1, 1]} : vector<8x128xf32> to vector<1x128xf32>
    %15 = vector.extract_strided_slice %13 {offsets = [1, 0], sizes = [1, 128], strides = [1, 1]} : vector<8x128xf32> to vector<1x128xf32>
    %16 = vector.extract_strided_slice %13 {offsets = [2, 0], sizes = [1, 128], strides = [1, 1]} : vector<8x128xf32> to vector<1x128xf32>
    %17 = vector.extract_strided_slice %13 {offsets = [3, 0], sizes = [1, 128], strides = [1, 1]} : vector<8x128xf32> to vector<1x128xf32>
    %18 = vector.extract_strided_slice %8 {offsets = [0, 0], sizes = [8, 1], strides = [1, 1]} : vector<8x2xf32> to vector<8x1xf32>
    %19 = vector.extract_strided_slice %9 {offsets = [0, 0], sizes = [1, 128], strides = [1, 1]} : vector<8x128xf32> to vector<1x128xf32>
    %20 = vector.broadcast %18 : vector<8x1xf32> to vector<8x128xf32>
    %21 = vector.broadcast %19 : vector<1x128xf32> to vector<8x128xf32>
    %22 = arith.mulf %20, %21 : vector<8x128xf32>
    %23 = vector.extract_strided_slice %8 {offsets = [0, 1], sizes = [8, 1], strides = [1, 1]} : vector<8x2xf32> to vector<8x1xf32>
    %24 = vector.extract_strided_slice %9 {offsets = [1, 0], sizes = [1, 128], strides = [1, 1]} : vector<8x128xf32> to vector<1x128xf32>
    %25 = vector.broadcast %23 : vector<8x1xf32> to vector<8x128xf32>
    %26 = vector.broadcast %24 : vector<1x128xf32> to vector<8x128xf32>
    %27 = arith.mulf %25, %26 : vector<8x128xf32>
    %28 = arith.addf %22, %27 : vector<8x128xf32>
    %29 = vector.broadcast %14 : vector<1x128xf32> to vector<8x128xf32>
    %30 = arith.addf %28, %29 : vector<8x128xf32>
    %cst_8 = arith.constant 0.000000e+00 : f32
    %31 = vector.broadcast %cst_8 : f32 to vector<8x128xf32>
    %32 = arith.maximumf %30, %31 : vector<8x128xf32>
    %33 = vector.extract_strided_slice %32 {offsets = [0, 0], sizes = [8, 32], strides = [1, 1]} : vector<8x128xf32> to vector<8x32xf32>
    %cst_9 = arith.constant dense<0.000000e+00> : vector<8x128xf32>
    %34 = tpu.matmul %33, %10, %cst_9 {dimension_numbers = #tpu.dot_dimension_numbers<[1], [0], [0], [1], [0, 0, 1, 1], [], []>} : vector<8x32xf32>, vector<32x128xf32>, vector<8x128xf32> -> vector<8x128xf32>
    %35 = vector.broadcast %15 : vector<1x128xf32> to vector<8x128xf32>
    %36 = arith.addf %34, %35 : vector<8x128xf32>
    %cst_10 = arith.constant 0.000000e+00 : f32
    %37 = vector.broadcast %cst_10 : f32 to vector<8x128xf32>
    %38 = arith.maximumf %36, %37 : vector<8x128xf32>
    %39 = vector.extract_strided_slice %38 {offsets = [0, 0], sizes = [8, 56], strides = [1, 1]} : vector<8x128xf32> to vector<8x56xf32>
    %cst_11 = arith.constant dense<0.000000e+00> : vector<8x128xf32>
    %40 = tpu.matmul %39, %11, %cst_11 {dimension_numbers = #tpu.dot_dimension_numbers<[1], [0], [0], [1], [0, 0, 1, 1], [], []>} : vector<8x56xf32>, vector<56x128xf32>, vector<8x128xf32> -> vector<8x128xf32>
    %41 = vector.broadcast %16 : vector<1x128xf32> to vector<8x128xf32>
    %42 = arith.addf %40, %41 : vector<8x128xf32>
    %cst_12 = arith.constant dense<0xFF800000> : vector<128xf32>
    %43 = vector.multi_reduction <maximumf>, %42, %cst_12 [0] : vector<8x128xf32> to vector<128xf32>
    %44 = vector.shape_cast %43 : vector<128xf32> to vector<1x128xf32>
    %45 = vector.broadcast %44 : vector<1x128xf32> to vector<8x128xf32>
    %46 = arith.subf %42, %45 : vector<8x128xf32>
    %47 = math.exp %46 : vector<8x128xf32>
    %cst_13 = arith.constant dense<0.000000e+00> : vector<128xf32>
    %48 = vector.multi_reduction <add>, %47, %cst_13 [0] : vector<8x128xf32> to vector<128xf32>
    %49 = vector.shape_cast %48 : vector<128xf32> to vector<1x128xf32>
    %50 = math.log %49 : vector<1x128xf32>
    %51 = arith.addf %44, %50 : vector<1x128xf32>
    %52 = vector.broadcast %51 : vector<1x128xf32> to vector<8x128xf32>
    %53 = arith.subf %42, %52 : vector<8x128xf32>
    %54 = vector.extract_strided_slice %42 {offsets = [0, 0], sizes = [8, 40], strides = [1, 1]} : vector<8x128xf32> to vector<8x40xf32>
    %cst_14 = arith.constant 0.000000e+00 : f32
    %55 = vector.broadcast %cst_14 : f32 to vector<8x40xf32>
    %56 = arith.maximumf %54, %55 : vector<8x40xf32>
    %cst_15 = arith.constant dense<0.000000e+00> : vector<8x128xf32>
    %57 = tpu.matmul %56, %12, %cst_15 {dimension_numbers = #tpu.dot_dimension_numbers<[1], [0], [0], [1], [0, 0, 1, 1], [], []>} : vector<8x40xf32>, vector<40x128xf32>, vector<8x128xf32> -> vector<8x128xf32>
    %58 = vector.broadcast %17 : vector<1x128xf32> to vector<8x128xf32>
    %59 = arith.addf %57, %58 : vector<8x128xf32>
    %60 = math.tanh %59 : vector<8x128xf32>
    %61 = tpu.iota {dimensions = array<i32: 1>} : vector<8x128xi32>
    %c3_i32 = arith.constant 3 : i32
    %62 = vector.broadcast %c3_i32 : i32 to vector<8x128xi32>
    %63 = arith.cmpi slt, %61, %62 : vector<8x128xi32>
    %64 = arith.select %63, %53, %60 : vector<8x128xi1>, vector<8x128xf32>
    %c0_16 = arith.constant 0 : index
    %c0_17 = arith.constant 0 : index
    %65 = vector.load %arg2[%c0_16, %c0_17] : memref<8x128xf32, #tpu.memory_space<vmem>>, vector<8x128xf32>
    tpu.vector_store %arg2[%c0_16, %c0_17], %64 {strides = array<i32>} : memref<8x128xf32, #tpu.memory_space<vmem>>, vector<8x128xf32>,
    return
  }
}

</mosaic_0001>

<bundles_post_ra>
// kernel: actor_critic_forward.1
= control target key start
LH: loop header
LB: loop body
LE: loop exit
PB: predicated region body
PF: predicated region fallthrough
CT: control target
= control target key end

     0   :  { %7 = vsyncpa [#allocation3], 0  ;;  %s483_s9 = smov [#allocation2]   ;;  %s541_s0 = inlined_call_operand.vmem [shape: f32[8,2], index: 0, kind: input, shape index: {}]   ;;  %s542_s1 = inlined_call_operand.hbm [shape: f32[144,128], index: 1, kind: input, shape index: {}]   ;;  %s543_s2 = inlined_call_operand.vmem [shape: f32[8,128], index: 2, kind: output, shape index: {}]  }
   0x1   :  { %s15_s10 = sshll.u32 %s483_s9, 4  ;;  %s459_s13 = scalar_lea.hbm %s542_s1, 2304  ;;  %s16_s10 = int_to_ptr.vmem [resolvable:$true] %s15_s10 }
   0x2   :  { %p460_p0 = scmp.ne.s32.totalorder %s542_s1, %s459_s13  ;;  %p463_p1 = scmp.lt.u32.totalorder %s459_s13, %s542_s1 }
   0x4   :  { %p465_p2 = pnand %p463_p1, %p460_p0 }
   0x6   :  { %468 = shalt.err (!%p465_p2)
}
   0x7   :  { %s469_s18 = scalar_lea.vmem %s16_s10, 2304  ;;  %p474_p4 = scmp.lt.s32.totalorder %s16_s10, %s16_s10 }
   0x8   :  { %p470_p3 = scmp.ne.s32.totalorder %s16_s10, %s469_s18  ;;  %p475_p5 = scmp.lt.s32.totalorder %s469_s18, %s469_s18 }
   0xa   :  { %p476_p6 = por %p475_p5, %p474_p4 }
   0xc   :  { %p477_p7 = pnand %p476_p6, %p470_p3 }
   0xe   :  { %480 = shalt.err (!%p477_p7)
}
   0xf   :  { %s484_s19 = smov 128   ;;  %s485_s20 = smov 8  }
  0x10   :  { %21 = dma.hbm_to_vmem [thread:$0]  %s542_s1, 2304, %s16_s10, [#allocation3], %s484_s19, %s484_s19, %s485_s20  }
  0x11   :  { %481 = dma.done.wait [#allocation3], 2304  }
  0x12   :  { %482 = vsyncadd [#allocation3], 4294964992  ;;  %v486_v0 = vmov 0   ;;  %v25_v1 = vld [vmem:[%s541_s0] sm:$0xff]  ;;  %vm27_vm0 = vcmask 15360   ;;  %v46_v18 = vld [vmem:[#allocation2 + $0x8] sm:$0xff]  ;;  %v68_v33 = vlaneseq }
  0x13   :  { %447 = vset.pattern.permute.xlu0 %v486_v0  ;;  %v26_v2 = vmul.f32 %v25_v1, %v25_v1  ;;  %v47_v19 = vld [vmem:[#allocation2 + $0x10] sm:$0xff]  ;;  %v487_v20 = vmov 1   ;;  %v488_v22 = vmov 0.0|0.0   ;;  %v48_v23 = vld [vmem:[#allocation2 + $0x18] sm:$0xff]  ;;  %v49_v24 = vld [vmem:[#allocation2 + $0x20] sm:$0xff]  ;;  %vm489_vm3 = vmmov 0  }
  0x14   :  { %v419_v21 = vpack.c.bf16 %v47_v19, %v46_v18  ;;  %418 = vmatprep.subr.bf16.mxu0 %v488_v22  ;;  %424 = vmatprep.subr.bf16.mxu1 %v488_v22  ;;  %v422_v25 = vpack.c.bf16 %v49_v24, %v48_v23  ;;  %v490_v26 = vmov 0.0   ;;  %v50_v27 = vld [vmem:[#allocation2 + $0x28] sm:$0xff]  ;;  %v51_v28 = vld [vmem:[#allocation2 + $0x30] sm:$0xff]  ;;  %v52_v29 = vld [vmem:[#allocation2 + $0x38] sm:$0xff]  ;;  %v524_v34 = vshrl.u32 %v68_v33, 7 }
  0x15   :  { %v28_v3 = vsel %vm27_vm0, %v26_v2, 0.0  ;;  %385 = vmatprep.mubr.msk.f32.mxu0 %vm489_vm3, %v490_v26  ;;  %402 = vmatprep.mubr.msk.f32.mxu1 %vm489_vm3, %v490_v26  ;;  %v425_v30 = vpack.c.bf16 %v51_v28, %v50_v27  ;;  %v53_v31 = vld [vmem:[#allocation2 + $0x40] sm:$0xff]  ;;  %v528_v41 = vld [vmem:[#allocation2 + $0x88] sm:$0xff]  ;;  %vm93_vm4 = vcmask 261120   ;;  %v55_v50 = vld [vmem:[#allocation2 + $0x50] sm:$0xff]  ;;  %vm172_vm5 = vcmask 457728  }
  0x16   :  { %v29_v4 = vrot.slane %v28_v3, 4  ;;  %420 = vmatpush3.bf16.msra.mxu0 %v419_v21  ;;  %v428_v32 = vpack.c.bf16 %v53_v31, %v52_v29  ;;  %v70_v35 = vsub.s32 0, %v524_v34  ;;  %v79_v36 = vsub.s32 1, %v524_v34  ;;  %v45_v37 = vld [vmem:[#allocation2] sm:$0xff]  ;;  %v54_v49 = vld [vmem:[#allocation2 + $0x48] sm:$0xff]  ;;  %v56_v52 = vld [vmem:[#allocation2 + $0x58] sm:$0xff] }
  0x17   :  { %421 = vmatprep.subr.bf16.mxu0 %v488_v22  ;;  %426 = vmatpush3.bf16.msra.mxu1 %v425_v30  ;;  %v431_v51 = vpack.c.bf16 %v55_v50, %v54_v49  ;;  %v57_v53 = vld [vmem:[#allocation2 + $0x60] sm:$0xff]  ;;  %v58_v54 = vld [vmem:[#allocation2 + $0x68] sm:$0xff]  ;;  %v59_v61 = vld [vmem:[#allocation2 + $0x70] sm:$0xff]  ;;  %vm270_vm6 = vcmask 326656   ;;  %v346_v29 = vand.u32 127, %v68_v33 }
  0x18   :  { %v30_v5 = vadd.f32 %v29_v4, %v28_v3  ;;  %427 = vmatprep.subr.bf16.mxu1 %v488_v22  ;;  %v71_v39 = vrot.slane %v45_v37, %v70_v35  ;;  %v80_v40 = vrot.slane %v45_v37, %v79_v36  ;;  %v86_v44 = vrot.slane %v528_v41, %v70_v35  ;;  %v60_v62 = vld [vmem:[#allocation2 + $0x78] sm:$0xff]  ;;  %v61_v0 = vld [vmem:[#allocation2 + $0x80] sm:$0xff] }
  0x19   :  { %v434_v55 = vpack.c.bf16 %v58_v54, %v57_v53  ;;  %v92_v56 = vrot.slane %v528_v41, %v79_v36  ;;  %v437_v63 = vpack.c.bf16 %v60_v62, %v59_v61  ;;  %vm347_vm7 = vcmp.lt.s32.totalorder %v346_v29, 3 }
  0x1a   :  { %v31_v6 = vrot.slane %v30_v5, 2  ;;  %423 = vmatpush3.bf16.msra.mxu0 %v422_v25 }
  0x1b   :  { %433 = vmatprep.subr.bf16.mxu0 %v488_v22  ;;  %429 = vmatpush3.bf16.msra.mxu1 %v428_v32 }
  0x1c   :  { %v32_v7 = vadd.f32 %v31_v6, %v30_v5  ;;  %430 = vmatprep.subr.bf16.mxu1 %v488_v22 }
  0x1e   :  { %v33_v8 = vrot.slane %v32_v7, 1 }
  0x1f   :  { %432 = vmatpush3.bf16.msra.mxu1 %v431_v51 }
  0x20   :  { %v34_v9 = vadd.f32 %v33_v8, %v32_v7  ;;  %400 = vmatprep.subr.mxu1 %v490_v26 }
  0x22   :  { %449 = vrsqrt.f32 %v34_v9  ;;  %vm37_vm1 = vcmp.eq.f32.partialorder %v34_v9, inf  ;;  %v40_v11 = vand.u32 2147483648, %v34_v9  ;;  %vm39_vm2 = vcmp.eq.f32.partialorder %v34_v9, 0.0 }
  0x23   :  { %401 = vmatpush3.msra.mxu1 %v56_v52 }
  0x2c   :  { %v450_v10 = vpop.eup %449 }
  0x2d   :  { %v36_v12 = vmul.f32 %v450_v10, %v34_v9 }
  0x2f   :  { %v38_v13 = vsel %vm37_vm1, %v34_v9, %v36_v12 }
  0x30   :  { %v41_v14 = vsel %vm39_vm2, %v40_v11, %v38_v13 }
  0x31   :  { %v42_v15 = vmax.f32 %v41_v14, 1e-12 }
  0x33   :  { %451 = vrcp.f32 %v42_v15 }
  0x3d   :  { %v452_v16 = vpop.eup %451 }
  0x3e   :  { %v44_v17 = vmul.f32 %v452_v16, %v25_v1  ;;  %v170_v1 = vsub.s32 2, %v524_v34 }
  0x40   :  { %65 = vperm.xlu0 %447, %v44_v17   ;;  %v171_v2 = vrot.slane %v528_v41, %v170_v1 }
  0x44   :  { %448 = vset.pattern.permute.xlu0 %v487_v20 }
  0x45   :  { %74 = vperm.xlu0 %448, %v44_v17  }
  0xbf   :  { %v66_v38 = vpop.permute.xlu0 %65 }
  0xc0   :  { %v72_v43 = vmul.f32 %v71_v39, %v66_v38 }
  0xc4   :  { %v75_v42 = vpop.permute.xlu0 %74 }
  0xc5   :  { %v81_v45 = vmul.f32 %v80_v40, %v75_v42 }
  0xc7   :  { %v82_v46 = vadd.f32 %v81_v45, %v72_v43 }
  0xc9   :  { %v87_v47 = vadd.f32 %v86_v44, %v82_v46 }
  0xcb   :  { %v88_v48 = vmax.f32 %v87_v47, 0.0 }
  0xcd   :  { %386 = vmatmul.mubr.msk.f32.vlgmr.msra.gmra.mrb[0].mxu0 %vm93_vm4, %v88_v48 }
  0xce   :  { %415 = vmatprep.mubr.msk.f32.mxu0 %vm489_vm3, %v490_v26  ;;  %435 = vmatpush3.bf16.msra.mxu0 %v434_v55 }
  0xcf   :  { %436 = vmatprep.subr.bf16.mxu0 %v488_v22  ;;  %v268_v22 = vsub.s32 3, %v524_v34 }
  0xd1   :  { %v269_v23 = vrot.slane %v528_v41, %v268_v22 }
  0xd2   :  { %438 = vmatpush3.bf16.msra.mxu0 %v437_v63 }
  0xd3   :  { %413 = vmatprep.subr.mxu0 %v490_v26 }
  0xd6   :  { %414 = vmatpush3.msra.mxu0 %v61_v0 }
 0x1a0   :  { %v163_v57 = vpop.f32.mrb[0].mxu0 }
 0x1a1   :  { %v164_v58 = vadd.f32 %v163_v57, %v92_v56  ;;  %v387_v59 = vpop.f32.mrb[1].mxu0 }
 0x1a3   :  { %v167_v60 = vmax.f32 %v164_v58, 0.0 }
 0x1a5   :  { %403 = vmatmul.mubr.msk.f32.vlgmr.msra.gmra.mrb[0].mxu1 %vm172_vm5, %v167_v60 }
 0x278   :  { %v242_v3 = vpop.f32.mrb[0].mxu1 }
 0x279   :  { %v243_v4 = vadd.f32 %v242_v3, %v171_v2  ;;  %v404_v5 = vpop.f32.mrb[1].mxu1 }
 0x27b   :  { %v265_v6 = vmax.f32 %v243_v4, 0.0  ;;  %v246_v7 = vrot.slane %v243_v4, 4 }
 0x27d   :  { %416 = vmatmul.mubr.msk.f32.vlgmr.msra.gmra.mrb[2].mxu0 %vm270_vm6, %v265_v6  ;;  %v247_v8 = vmax.f32 %v243_v4, %v246_v7 }
 0x27f   :  { %v248_v9 = vrot.slane %v247_v8, 2 }
 0x281   :  { %v249_v10 = vmax.f32 %v247_v8, %v248_v9 }
 0x283   :  { %v250_v11 = vrot.slane %v249_v10, 1 }
 0x285   :  { %v251_v12 = vmax.f32 %v249_v10, %v250_v11 }
 0x287   :  { %v252_v13 = vsub.f32 %v243_v4, %v251_v12 }
 0x289   :  { %v253_v14 = vmul.f32 1.442695, %v252_v13 }
 0x28b   :  { %453 = vpow2.f32 %v253_v14 }
 0x295   :  { %v454_v15 = vpop.eup %453 }
 0x296   :  { %v255_v16 = vrot.slane %v454_v15, 4 }
 0x298   :  { %v256_v17 = vadd.f32 %v454_v15, %v255_v16 }
 0x29a   :  { %v257_v18 = vrot.slane %v256_v17, 2 }
 0x29c   :  { %v258_v19 = vadd.f32 %v257_v18, %v256_v17 }
 0x29e   :  { %v259_v20 = vrot.slane %v258_v19, 1 }
 0x2a0   :  { %v260_v21 = vadd.f32 %v259_v20, %v258_v19 }
 0x2a2   :  { %455 = vlog2.f32 %v260_v21 }
 0x2ac   :  { %v456_v25 = vpop.eup %455 }
 0x2ad   :  { %v262_v28 = vmul.f32 0.6931472, %v456_v25 }
 0x2af   :  { %v263_v30 = vadd.f32 %v262_v28, %v251_v12 }
 0x2b1   :  { %v264_v31 = vsub.f32 %v243_v4, %v263_v30 }
 0x350   :  { %v340_v24 = vpop.f32.mrb[2].mxu0 }
 0x351   :  { %v341_v26 = vadd.f32 %v340_v24, %v269_v23  ;;  %v417_v27 = vpop.f32.mrb[3].mxu0 }
 0x353   :  { %457 = vtanh.f32 %v341_v26 }
 0x35d   :  { %v458_v32 = vpop.eup %457 }
 0x35e   :  { %v348_v35 = vsel %vm347_vm7, %v264_v31, %v458_v32 }
 0x35f   :  { %349 = vst [vmem:[%s543_s2] sm:$0xff] %v348_v35 }
 0x360   :  { %354 = vsyncpa [#allocation3], 1 }

</bundles_post_ra>
